<compile_context>
chip_gen: v6e
topology: v6e:2x2x1
jax: 0.10.0
libtpu: 0.0.40
codegen_flags: <defaults>
</compile_context>

<pallas_src>
import jax
import jax.numpy as jnp
from jax.experimental import pallas as pl
from jax.experimental.pallas import tpu as pltpu


def _round_up(x, m):
    return (x + m - 1) // m * m


def _cdiv(a, b):
    return -(-a // b)


def _pair(v):
    if isinstance(v, (tuple, list)):
        return (int(v[0]), int(v[1]))
    return (int(v), int(v))


# Largest K handled as a single un-tiled reduction step (VMEM-friendly).
_MAX_SINGLE_K = 2048


def _pick_tm(m, cap=512):
    """Pick an M tile that minimizes remainder waste; full-dim tile if small."""
    if m <= cap:
        return m                      # block == full dim is always legal
    best, best_waste = 128, None
    for t in (512, 448, 384, 320, 256, 192, 128):
        waste = _cdiv(m, t) * t - m
        if best_waste is None or waste < best_waste:
            best, best_waste = t, waste
    return best


# ---------------------------------------------------------------------------
# Pallas kernels
# ---------------------------------------------------------------------------
def _matmul_single_k_kernel(patches_ref, wq_ref, affine_ref, out_ref):
    """Single-K-step fast path: no accumulator scratch, direct epilogue write."""
    a = patches_ref[...]
    w = wq_ref[...].astype(a.dtype)            # int8 -> bf16 in ONE cast (exact)
    acc = jnp.dot(a, w, preferred_element_type=jnp.float32)   # MXU, f32 acc
    affine = affine_ref[...]
    scale = affine[0:1, :]                     # (1, tn) broadcast over rows
    bias = affine[1:2, :]
    out_ref[...] = (acc * scale + bias).astype(out_ref.dtype)


def _matmul_multi_k_kernel(patches_ref, wq_ref, affine_ref, out_ref, acc_ref):
    """K-tiled path with a persistent VMEM f32 accumulator."""
    k = pl.program_id(3)
    a = patches_ref[...]
    w = wq_ref[...].astype(a.dtype)            # single cast, no f32 intermediate
    prod = jnp.dot(a, w, preferred_element_type=jnp.float32)

    @pl.when(k == 0)
    def _first():
        acc_ref[...] = prod                    # write (no zero-init + RMW)

    @pl.when(k > 0)
    def _accum():
        acc_ref[...] += prod

    @pl.when(k == pl.num_programs(3) - 1)
    def _epilogue():
        affine = affine_ref[...]
        out_ref[...] = (acc_ref[...] * affine[0:1, :] + affine[1:2, :]).astype(out_ref.dtype)


def _palettized_matmul(patches, wq, affine, *, tm, tn, tk, out_dtype):
    """patches: (G, M, Kp) bf16/f32; wq: (G, Kp, Cp) int8;
    affine: (G, 8, Cp) f32 (row0 = scale, row1 = bias).  Returns (G, M, Cp)."""
    g, m, kp = patches.shape
    _, _, cp = wq.shape
    assert kp % tk == 0 and cp % tn == 0
    m_tiles = _cdiv(m, tm)
    n_tiles = cp // tn
    k_tiles = kp // tk

    # Explicit VMEM budget (double-buffered inputs + output + scratch), generous
    # rounding.  Stays well under v5e's 16 MiB scoped default and v7x's 64 MiB.
    def _tile_bytes(r, c, itemsize):
        return _round_up(r, 32) * _round_up(c, 128) * itemsize
    vmem_needed = (2 * _tile_bytes(tm, tk, patches.dtype.itemsize)
                   + 2 * _tile_bytes(tk, tn, 1)
                   + 2 * _tile_bytes(tm, tn, 4)
                   + 2 * _tile_bytes(8, tn, 4)
                   + _tile_bytes(tm, tn, 4))
    vmem_limit = int(min(max(vmem_needed + (8 << 20), 32 << 20), 64 << 20))

    # Advisory cost estimate; bytes account for re-streaming (patches once per
    # Cout tile, weights/affine once per M tile).
    flops = 2 * g * m * kp * cp
    bytes_accessed = (patches.size * patches.dtype.itemsize * n_tiles
                      + wq.size * m_tiles
                      + affine.size * 4 * m_tiles
                      + g * m * cp * jnp.dtype(out_dtype).itemsize)
    cost = pl.CostEstimate(flops=flops, transcendentals=0,
                           bytes_accessed=bytes_accessed)

    out_shape = jax.ShapeDtypeStruct((g, m, cp), out_dtype)

    if k_tiles == 1:
        # Common small-conv case: one K step, no accumulator RMW at all.
        return pl.pallas_call(
            _matmul_single_k_kernel,
            out_shape=out_shape,
            grid_spec=pltpu.PrefetchScalarGridSpec(
                num_scalar_prefetch=0,
                grid=(m_tiles, n_tiles, g),          # M first: v7x megacore split
                in_specs=[
                    pl.BlockSpec((None, tm, tk), lambda i, j, gi: (gi, i, 0)),
                    pl.BlockSpec((None, tk, tn), lambda i, j, gi: (gi, 0, j)),
                    pl.BlockSpec((None, 8, tn), lambda i, j, gi: (gi, 0, j)),
                ],
                out_specs=pl.BlockSpec((None, tm, tn), lambda i, j, gi: (gi, i, j)),
            ),
            compiler_params=pltpu.CompilerParams(
                dimension_semantics=("parallel", "parallel", "parallel"),
                vmem_limit_bytes=vmem_limit),
            cost_estimate=cost,
        )(patches, wq, affine)

    return pl.pallas_call(
        _matmul_multi_k_kernel,
        out_shape=out_shape,
        grid_spec=pltpu.PrefetchScalarGridSpec(
            num_scalar_prefetch=0,
            grid=(m_tiles, n_tiles, g, k_tiles),     # K innermost ("arbitrary")
            in_specs=[
                pl.BlockSpec((None, tm, tk), lambda i, j, gi, k: (gi, i, k)),
                pl.BlockSpec((None, tk, tn), lambda i, j, gi, k: (gi, k, j)),
                pl.BlockSpec((None, 8, tn), lambda i, j, gi, k: (gi, 0, j)),
            ],
            out_specs=pl.BlockSpec((None, tm, tn), lambda i, j, gi, k: (gi, i, j)),
            scratch_shapes=[pltpu.VMEM((tm, tn), jnp.float32)],
        ),
        compiler_params=pltpu.CompilerParams(
            dimension_semantics=("parallel", "parallel", "parallel", "arbitrary"),
            vmem_limit_bytes=vmem_limit),
        cost_estimate=cost,
    )(patches, wq, affine)


# ---------------------------------------------------------------------------
# im2col glue (plain JAX): NHWC -> (groups, M, Kg_pad), K ordered (kh, kw, cin_g)
# ---------------------------------------------------------------------------
def _im2col_grouped(x_nhwc, kh, kw, stride, padding, dilation, groups, kg_pad):
    n, h, w, c = x_nhwc.shape
    cg = c // groups
    sh, sw = stride
    ph, pw = padding
    dh, dw = dilation
    h_out = (h + 2 * ph - dh * (kh - 1) - 1) // sh + 1
    w_out = (w + 2 * pw - dw * (kw - 1) - 1) // sw + 1

    xp = jnp.pad(x_nhwc, ((0, 0), (ph, ph), (pw, pw), (0, 0))) if (ph or pw) else x_nhwc
    kg = cg * kh * kw
    per_group = []
    for g in range(groups):
        chunks = []
        for i in range(kh):
            for j in range(kw):
                chunks.append(
                    xp[:, i * dh: i * dh + (h_out - 1) * sh + 1: sh,
                          j * dw: j * dw + (w_out - 1) * sw + 1: sw,
                          g * cg:(g + 1) * cg])
        if kg_pad > kg:
            # Tiny sublane-alignment pad (<=7 cols or up to 255 for tiled K);
            # born inside the single concat materialization.
            chunks.append(jnp.zeros((n, h_out, w_out, kg_pad - kg), x_nhwc.dtype))
        per_group.append(jnp.concatenate(chunks, axis=-1))
    patches = jnp.stack(per_group, axis=0).reshape(groups, n * h_out * w_out, kg_pad)
    return patches, h_out, w_out


# ---------------------------------------------------------------------------
# Module
# ---------------------------------------------------------------------------
class SymmetricConv2d:
    """JAX/Pallas port of the PyTorch SymmetricConv2d module (inference)."""

    def __init__(self, weight, bias, stride, dilation, groups, padding,
                 palette_size=255,
                 allow_weights_to_flip_signs_in_quantization=False,
                 compute_dtype=jnp.bfloat16,     # activations use bf16 on the MXU
                 out_dtype=jnp.float32):         # keep f32 output for API fidelity
        if not allow_weights_to_flip_signs_in_quantization:
            assert palette_size < 256
        signed_palette_size = palette_size // 2
        weight = jnp.asarray(weight, jnp.float32)
        max_abs = jnp.max(jnp.abs(weight))
        # Guard the degenerate all-zero-weights case (torch would emit NaNs).
        scaling_factor = jnp.where(max_abs > 0,
                                   max_abs / signed_palette_size,
                                   jnp.float32(1.0))
        scaled = jnp.round(jnp.clip(weight, -max_abs, max_abs) / scaling_factor)
        self.weight = scaled.astype(jnp.int8)            # (Cout, Cin/groups, kh, kw)
        self.scaling_factor = scaling_factor.astype(jnp.float32)
        self.bias = None if bias is None else jnp.asarray(bias, jnp.float32)
        self.stride = _pair(stride)
        self.dilation = _pair(dilation)
        self.groups = int(groups)
        self.padding = _pair(padding)
        self.compute_dtype = compute_dtype
        self.out_dtype = out_dtype

        cout, cin_g, kh, kw = self.weight.shape
        g = self.groups
        cout_g = cout // g
        kg = cin_g * kh * kw

        # ---- static tiling decisions (weights/config only) ----
        if kg <= _MAX_SINGLE_K:
            kg_pad = _round_up(kg, 8)       # no 128-padding of K (HBM saver)
            tk = kg_pad                     # single K step; block == full dim is legal
        else:
            kg_pad = _round_up(kg, 256)     # 256-multiple K tiles: full-width v6e/v7x MXU
            tk = 512 if kg_pad % 512 == 0 else 256
        c_pad = _round_up(cout_g, 128)
        if c_pad > 128:
            c_pad = _round_up(c_pad, 256)   # keep N 256-wide-friendly (v6e/v7x)
        # Collapse the Cout grid axis whenever possible so patches stream once.
        tn = c_pad if c_pad <= 512 else (512 if c_pad % 512 == 0 else 256)

        self._kh, self._kw = kh, kw
        self._cout, self._cout_g = cout, cout_g
        self._kg, self._kg_pad = kg, kg_pad
        self._c_pad, self._tn, self._tk = c_pad, tn, tk

        # ---- weight repack + affine (once at init, not per forward) ----
        # K ordered (kh, kw, cin_g) to match the im2col layout (keep in sync!).
        w_mat = (self.weight
                 .reshape(g, cout_g, cin_g, kh, kw)
                 .transpose(0, 3, 4, 2, 1)               # (g, kh, kw, cin_g, cout_g)
                 .reshape(g, kg, cout_g))
        self._wq = jnp.zeros((g, kg_pad, c_pad), jnp.int8).at[:, :kg, :cout_g].set(w_mat)

        affine = jnp.zeros((g, 8, c_pad), jnp.float32)
        affine = affine.at[:, 0, :].set(self.scaling_factor)   # row 0 = dequant scale
        if self.bias is not None:
            affine = affine.at[:, 1, :cout_g].set(self.bias.reshape(g, cout_g))  # row 1 = bias
        self._affine = affine

        self._fwd = jax.jit(self._forward_impl)

    def _forward_impl(self, x, wq, affine):
        g = self.groups
        kh, kw = self._kh, self._kw
        cout_g = self._cout_g
        n = x.shape[0]

        # NCHW -> NHWC once (lane-dense), bf16 halves HBM traffic on the
        # blown-up patches tensor.  (Accuracy knob: compute_dtype.)
        x_nhwc = jnp.transpose(x, (0, 2, 3, 1)).astype(self.compute_dtype)

        patches, h_out, w_out = _im2col_grouped(
            x_nhwc, kh, kw, self.stride, self.padding, self.dilation, g, self._kg_pad)
        m = n * h_out * w_out
        tm = _pick_tm(m)

        out = _palettized_matmul(patches, wq, affine,
                                 tm=tm, tn=self._tn, tk=self._tk,
                                 out_dtype=self.out_dtype)       # (g, M, c_pad)
        out = out[:, :, :cout_g]                                  # drop lane padding
        out = out.reshape(g, n, h_out, w_out, cout_g)
        # Single transpose back to the NCHW API layout at the boundary.
        out = jnp.transpose(out, (1, 0, 4, 2, 3)).reshape(n, self._cout, h_out, w_out)
        return out

    def __call__(self, x):
        return self._fwd(jnp.asarray(x, jnp.float32), self._wq, self._affine)


# ---------------------------------------------------------------------------
# Reference (pure JAX, f32) + demo / self-check
# ---------------------------------------------------------------------------
def _reference_conv(x, mod):
    w_full = mod.weight.astype(jnp.float32) * mod.scaling_factor
    ph, pw = mod.padding
    out = jax.lax.conv_general_dilated(
        x.astype(jnp.float32), w_full, window_strides=mod.stride,
        padding=[(ph, ph), (pw, pw)], rhs_dilation=mod.dilation,
        feature_group_count=mod.groups,
        dimension_numbers=("NCHW", "OIHW", "NCHW"),
        precision=jax.lax.Precision.HIGHEST)
    if mod.bias is not None:
        out = out + mod.bias[None, :, None, None]
    return out


def _check(out, ref, atol, rtol, tag):
    assert out.shape == ref.shape, (tag, out.shape, ref.shape)
    err = float(jnp.max(jnp.abs(out.astype(jnp.float32) - ref)))
    assert bool(jnp.allclose(out.astype(jnp.float32), ref, atol=atol, rtol=rtol)), (
        "%s max abs err = %f" % (tag, err))


if __name__ == "__main__":
    key = jax.random.PRNGKey(0)
    k_x, k_w, k_b, k_x2, k_w2 = jax.random.split(key, 5)

    N, Cin, H, W = 2, 4, 16, 16
    Cout, KH, KW = 8, 3, 3

    x = jax.random.normal(k_x, (N, Cin, H, W), jnp.float32)
    bias = jax.random.normal(k_b, (Cout,), jnp.float32)

    # 1) groups=1 and groups=2 (group grid axis), single-K fast path.
    for groups in (1, 2):
        weight = jax.random.normal(k_w, (Cout, Cin // groups, KH, KW), jnp.float32)
        mod = SymmetricConv2d(weight, bias, (1, 1), (1, 1), groups, (1, 1),
                              palette_size=255)
        out = jax.block_until_ready(mod(x))
        ref = _reference_conv(x, mod)
        _check(out, ref, atol=1e-1, rtol=5e-2, tag="groups=%d" % groups)

    # 2) stride-2, odd spatial size -> M not a multiple of 8 (full-dim M tile /
    #    partial-store path flagged in review).
    x2 = jax.random.normal(k_x2, (N, Cin, 13, 13), jnp.float32)
    weight = jax.random.normal(k_w, (Cout, Cin, KH, KW), jnp.float32)
    mod = SymmetricConv2d(weight, bias, (2, 2), (1, 1), 1, (1, 1), palette_size=255)
    out = jax.block_until_ready(mod(x2))
    ref = _reference_conv(x2, mod)
    _check(out, ref, atol=1e-1, rtol=5e-2, tag="stride2")

    # 3) large Cin -> K = 2304 exercises the K-tiled accumulator kernel.
    CinBig = 256
    x3 = jax.random.normal(k_x2, (1, CinBig, 8, 8), jnp.float32)
    w3 = jax.random.normal(k_w2, (Cout, CinBig, KH, KW), jnp.float32)
    mod = SymmetricConv2d(w3, bias, (1, 1), (1, 1), 1, (1, 1), palette_size=255)
    out = jax.block_until_ready(mod(x3))
    ref = _reference_conv(x3, mod)
    # bf16 activation rounding error grows with sqrt(K); loosen atol for K=2304.
    _check(out, ref, atol=6e-1, rtol=5e-2, tag="bigK")

    print("KERNEL_OK")
</pallas_src>

<mosaic_0001>
module attributes {stable_mosaic.version = 11 : i64} {
  func.func @_matmul_single_k_kernel(%arg0: i32, %arg1: i32, %arg2: i32, %arg3: memref<1x512x40xbf16, #tpu.memory_space<vmem>>, %arg4: memref<1x40x128xi8, #tpu.memory_space<vmem>>, %arg5: memref<1x8x128xf32, #tpu.memory_space<vmem>>, %arg6: memref<1x512x128xf32, #tpu.memory_space<vmem>>) attributes {dimension_semantics = [#tpu.dimension_semantics<parallel>, #tpu.dimension_semantics<parallel>, #tpu.dimension_semantics<parallel>], iteration_bounds = array<i64: 1, 1, 1>, scalar_prefetch = 0 : i64, scratch_operands = 0 : i64, tpu.core_type = #tpu.core_type<tc>, window_params = [{transform_indices = @transform_0, window_bounds = array<i64: 1, 512, 40>}, {transform_indices = @transform_1, window_bounds = array<i64: 1, 40, 128>}, {transform_indices = @transform_2, window_bounds = array<i64: 1, 8, 128>}, {transform_indices = @transform_3, window_bounds = array<i64: 1, 512, 128>}]} {
    %c0 = arith.constant 0 : index
    %c0_0 = arith.constant 0 : index
    %c0_1 = arith.constant 0 : index
    %0 = vector.load %arg3[%c0, %c0_0, %c0_1] : memref<1x512x40xbf16, #tpu.memory_space<vmem>>, vector<1x512x40xbf16>
    %1 = vector.shape_cast %0 : vector<1x512x40xbf16> to vector<512x40xbf16>
    %c0_2 = arith.constant 0 : index
    %c0_3 = arith.constant 0 : index
    %c0_4 = arith.constant 0 : index
    %2 = vector.load %arg4[%c0_2, %c0_3, %c0_4] : memref<1x40x128xi8, #tpu.memory_space<vmem>>, vector<1x40x128xi8>
    %3 = vector.shape_cast %2 : vector<1x40x128xi8> to vector<40x128xi8>
    %4 = arith.sitofp %3 : vector<40x128xi8> to vector<40x128xbf16>
    %cst = arith.constant dense<0.000000e+00> : vector<512x128xf32>
    %5 = tpu.matmul %1, %4, %cst {dimension_numbers = #tpu.dot_dimension_numbers<[1], [0], [0], [1], [0, 0, 1, 1], [], []>} : vector<512x40xbf16>, vector<40x128xbf16>, vector<512x128xf32> -> vector<512x128xf32>
    %c0_5 = arith.constant 0 : index
    %c0_6 = arith.constant 0 : index
    %c0_7 = arith.constant 0 : index
    %6 = vector.load %arg5[%c0_5, %c0_6, %c0_7] : memref<1x8x128xf32, #tpu.memory_space<vmem>>, vector<1x8x128xf32>
    %7 = vector.shape_cast %6 : vector<1x8x128xf32> to vector<8x128xf32>
    %8 = vector.extract_strided_slice %7 {offsets = [0, 0], sizes = [1, 128], strides = [1, 1]} : vector<8x128xf32> to vector<1x128xf32>
    %9 = vector.extract_strided_slice %7 {offsets = [1, 0], sizes = [1, 128], strides = [1, 1]} : vector<8x128xf32> to vector<1x128xf32>
    %10 = vector.broadcast %8 : vector<1x128xf32> to vector<512x128xf32>
    %11 = arith.mulf %5, %10 : vector<512x128xf32>
    %12 = vector.broadcast %9 : vector<1x128xf32> to vector<512x128xf32>
    %13 = arith.addf %11, %12 : vector<512x128xf32>
    %c0_8 = arith.constant 0 : index
    %c0_9 = arith.constant 0 : index
    %c0_10 = arith.constant 0 : index
    %14 = vector.load %arg6[%c0_8, %c0_9, %c0_10] : memref<1x512x128xf32, #tpu.memory_space<vmem>>, vector<1x512x128xf32>
    %15 = vector.shape_cast %14 : vector<1x512x128xf32> to vector<512x128xf32>
    %16 = vector.shape_cast %13 : vector<512x128xf32> to vector<1x512x128xf32>
    tpu.vector_store %arg6[%c0_8, %c0_9, %c0_10], %16 {strides = array<i32>} : memref<1x512x128xf32, #tpu.memory_space<vmem>>, vector<1x512x128xf32>,
    return
  }
  func.func @transform_0(%arg0: i32, %arg1: i32, %arg2: i32) -> (i32, i32, i32) {
    %c0_i32 = arith.constant 0 : i32
    %c0_i32_0 = arith.constant 0 : i32
    return %arg2, %arg0, %c0_i32 : i32, i32, i32
  }
  func.func @transform_1(%arg0: i32, %arg1: i32, %arg2: i32) -> (i32, i32, i32) {
    %c0_i32 = arith.constant 0 : i32
    %c0_i32_0 = arith.constant 0 : i32
    return %arg2, %c0_i32, %arg1 : i32, i32, i32
  }
  func.func @transform_2(%arg0: i32, %arg1: i32, %arg2: i32) -> (i32, i32, i32) {
    %c0_i32 = arith.constant 0 : i32
    %c0_i32_0 = arith.constant 0 : i32
    return %arg2, %c0_i32, %arg1 : i32, i32, i32
  }
  func.func @transform_3(%arg0: i32, %arg1: i32, %arg2: i32) -> (i32, i32, i32) {
    %c0_i32 = arith.constant 0 : i32
    return %arg2, %arg0, %arg1 : i32, i32, i32
  }
}

</mosaic_0001>

<bundles_post_ra>
// kernel: _forward_impl.1
= control target key start
LH: loop header
LB: loop body
LE: loop exit
PB: predicated region body
PF: predicated region fallthrough
CT: control target
= control target key end

     0   :  { %vm264_vm0 = vcmask 326656   ;;  %vm361_vm1 = vcmask 1043456   ;;  %v655_v46 = vlaneseq  ;;  %s1561_s1 = inlined_call_operand.vmem [shape: s8[1,40,128], index: 1, kind: input, shape index: {}]   ;;  %s1562_s0 = inlined_call_operand.vmem [shape: bf16[1,512,40], index: 0, kind: input, shape index: {}]   ;;  %s1563_s2 = inlined_call_operand.vmem [shape: f32[1,8,128], index: 2, kind: input, shape index: {}]   ;;  %s1564_s3 = inlined_call_operand.vmem [shape: f32[1,512,128], index: 3, kind: output, shape index: {}]  }
   0x1   :  { %v83_v0 = vld [vmem:[%s1561_s1 + $0x8] sm:$0x3]  ;;  %v81_v1 = vld [vmem:[%s1561_s1 + $0x4] sm:$0x3]  ;;  %v82_v2 = vld [vmem:[%s1561_s1 + $0x6] sm:$0x3] }
   0x2   :  { %v88_v3 = vunpack.c.l.s8.bf16 %v83_v0  ;;  %v86_v4 = vunpack.c.l.s8.bf16 %v81_v1  ;;  %v87_v5 = vunpack.c.l.s8.bf16 %v82_v2  ;;  %v79_v6 = vld [vmem:[%s1561_s1] sm:$0x3]  ;;  %v80_v7 = vld [vmem:[%s1561_s1 + $0x2] sm:$0x3]  ;;  %v1041_v16 = vld [vmem:[%s1562_s0 + $0x8] sm:$0xff]   ;;  %v656_v47 = vshrl.u32 %v655_v46, 7 }
   0x3   :  { %v1039_v8 = vld [vmem:[%s1562_s0] sm:$0xff]   ;;  %v84_v11 = vunpack.c.l.s8.bf16 %v79_v6  ;;  %v85_v12 = vunpack.c.l.s8.bf16 %v80_v7  ;;  %v1042_v17 = vld [vmem:[%s1562_s0 + $0x88] sm:$0xff]   ;;  %v1043_v18 = vld [vmem:[%s1562_s0 + $0x10] sm:$0xff]  }
   0x4   :  { %v893_v9 = vcombine.low %v88_v3, %v88_v3  ;;  %v892_v10 = vcombine.low %v86_v4, %v87_v5  ;;  %967 = vmatprep.mubr.msk.bf16.mxu0 %vm264_vm0, %v1039_v8  ;;  %v1040_v13 = vld [vmem:[%s1562_s0 + $0x80] sm:$0xff]   ;;  %v1044_v19 = vld [vmem:[%s1562_s0 + $0x90] sm:$0xff]   ;;  %v1045_v20 = vld [vmem:[%s1562_s0 + $0x18] sm:$0xff]   ;;  %v657_v48 = vsub.s32 0, %v656_v47  ;;  %v725_v50 = vsub.s32 1, %v656_v47 }
   0x5   :  { %v891_v15 = vcombine.low %v84_v11, %v85_v12  ;;  %999 = vmatprep.mubr.msk.bf16.mxu1 %vm264_vm0, %v1040_v13  ;;  %v1046_v21 = vld [vmem:[%s1562_s0 + $0x98] sm:$0xff]   ;;  %v1047_v22 = vld [vmem:[%s1562_s0 + $0x20] sm:$0xff]   ;;  %v1049_v24 = vld [vmem:[%s1562_s0 + $0x28] sm:$0xff]  }
   0x6   :  { %1037 = vmatprep.subr.msk.bf16.mxu0 %vm361_vm1, %v893_v9  ;;  %1038 = vmatprep.subr.msk.bf16.mxu1 %vm361_vm1, %v893_v9  ;;  %v363_v14 = vsel %vm361_vm1, %v893_v9, 0  ;;  %v1048_v23 = vld [vmem:[%s1562_s0 + $0xa0] sm:$0xff]   ;;  %v1050_v25 = vld [vmem:[%s1562_s0 + $0xa8] sm:$0xff]   ;;  %v1051_v26 = vld [vmem:[%s1562_s0 + $0x30] sm:$0xff]  }
   0x7   :  { %962 = vmatpush3.bf16.msra.mxu0 %v363_v14  ;;  %1034 = vmatpush3.bf16.msra.mxu1 %v363_v14  ;;  %v1052_v27 = vld [vmem:[%s1562_s0 + $0xb0] sm:$0xff]   ;;  %v1053_v28 = vld [vmem:[%s1562_s0 + $0x38] sm:$0xff]   ;;  %v1055_v30 = vld [vmem:[%s1562_s0 + $0x40] sm:$0xff]  }
   0x8   :  { %963 = vmatprep.subr.bf16.mxu0 %v892_v10  ;;  %1032 = vmatprep.subr.bf16.mxu1 %v892_v10  ;;  %v1054_v29 = vld [vmem:[%s1562_s0 + $0xb8] sm:$0xff]   ;;  %v1056_v31 = vld [vmem:[%s1562_s0 + $0xc0] sm:$0xff]   ;;  %v1057_v32 = vld [vmem:[%s1562_s0 + $0x48] sm:$0xff]  }
   0x9   :  { %v1058_v33 = vld [vmem:[%s1562_s0 + $0xc8] sm:$0xff]   ;;  %v1059_v34 = vld [vmem:[%s1562_s0 + $0x50] sm:$0xff]   ;;  %v1061_v36 = vld [vmem:[%s1562_s0 + $0x58] sm:$0xff]  }
   0xa   :  { %v1060_v35 = vld [vmem:[%s1562_s0 + $0xd0] sm:$0xff]   ;;  %v1062_v37 = vld [vmem:[%s1562_s0 + $0xd8] sm:$0xff]   ;;  %v1063_v38 = vld [vmem:[%s1562_s0 + $0x60] sm:$0xff]  }
   0xb   :  { %964 = vmatpush3.bf16.msra.mxu0 %v892_v10  ;;  %1035 = vmatpush3.bf16.msra.mxu1 %v892_v10  ;;  %v1064_v39 = vld [vmem:[%s1562_s0 + $0xe0] sm:$0xff]   ;;  %v1065_v40 = vld [vmem:[%s1562_s0 + $0x68] sm:$0xff]   ;;  %v1067_v42 = vld [vmem:[%s1562_s0 + $0x70] sm:$0xff]  }
   0xc   :  { %965 = vmatprep.subr.bf16.mxu0 %v891_v15  ;;  %1033 = vmatprep.subr.bf16.mxu1 %v891_v15  ;;  %v1066_v41 = vld [vmem:[%s1562_s0 + $0xe8] sm:$0xff]   ;;  %v1068_v43 = vld [vmem:[%s1562_s0 + $0xf0] sm:$0xff]   ;;  %v1069_v44 = vld [vmem:[%s1562_s0 + $0x78] sm:$0xff]  }
   0xd   :  { %v1070_v45 = vld [vmem:[%s1562_s0 + $0xf8] sm:$0xff]   ;;  %v654_v49 = vld [vmem:[%s1563_s2] sm:$0xff] }
   0xe   :  { %v1237_v51 = vrot.slane %v654_v49, %v657_v48  ;;  %v1239_v52 = vrot.slane %v654_v49, %v725_v50 }
   0xf   :  { %966 = vmatpush3.bf16.msra.mxu0 %v891_v15  ;;  %1036 = vmatpush3.bf16.msra.mxu1 %v891_v15 }
  0x12   :  { %968 = vmatmul.mubr.msk.bf16.vlgmr.msra.gmra.mxu0 %vm264_vm0, %v1041_v16  ;;  %1000 = vmatmul.mubr.msk.bf16.vlgmr.msra.gmra.mxu1 %vm264_vm0, %v1042_v17 }
  0x13   :  { %971 = vmatprep.mubr.msk.bf16.mxu0 %vm264_vm0, %v1043_v18  ;;  %1003 = vmatprep.mubr.msk.bf16.mxu1 %vm264_vm0, %v1044_v19 }
  0x1a   :  { %972 = vmatmul.mubr.msk.bf16.gmra.mxu0 %vm264_vm0, %v1045_v20  ;;  %1004 = vmatmul.mubr.msk.bf16.gmra.mxu1 %vm264_vm0, %v1046_v21 }
  0x1b   :  { %975 = vmatprep.mubr.msk.bf16.mxu0 %vm264_vm0, %v1047_v22  ;;  %1007 = vmatprep.mubr.msk.bf16.mxu1 %vm264_vm0, %v1048_v23 }
  0x22   :  { %976 = vmatmul.mubr.msk.bf16.gmra.mxu0 %vm264_vm0, %v1049_v24  ;;  %1008 = vmatmul.mubr.msk.bf16.gmra.mxu1 %vm264_vm0, %v1050_v25 }
  0x23   :  { %979 = vmatprep.mubr.msk.bf16.mxu0 %vm264_vm0, %v1051_v26  ;;  %1011 = vmatprep.mubr.msk.bf16.mxu1 %vm264_vm0, %v1052_v27 }
  0x2a   :  { %980 = vmatmul.mubr.msk.bf16.gmra.mxu0 %vm264_vm0, %v1053_v28  ;;  %1012 = vmatmul.mubr.msk.bf16.gmra.mxu1 %vm264_vm0, %v1054_v29 }
  0x2b   :  { %983 = vmatprep.mubr.msk.bf16.mxu0 %vm264_vm0, %v1055_v30  ;;  %1015 = vmatprep.mubr.msk.bf16.mxu1 %vm264_vm0, %v1056_v31 }
  0x32   :  { %984 = vmatmul.mubr.msk.bf16.gmra.mxu0 %vm264_vm0, %v1057_v32  ;;  %1016 = vmatmul.mubr.msk.bf16.gmra.mxu1 %vm264_vm0, %v1058_v33 }
  0x33   :  { %987 = vmatprep.mubr.msk.bf16.mxu0 %vm264_vm0, %v1059_v34  ;;  %1019 = vmatprep.mubr.msk.bf16.mxu1 %vm264_vm0, %v1060_v35 }
  0x3a   :  { %988 = vmatmul.mubr.msk.bf16.gmra.mxu0 %vm264_vm0, %v1061_v36  ;;  %1020 = vmatmul.mubr.msk.bf16.gmra.mxu1 %vm264_vm0, %v1062_v37 }
  0x3b   :  { %991 = vmatprep.mubr.msk.bf16.mxu0 %vm264_vm0, %v1063_v38  ;;  %1023 = vmatprep.mubr.msk.bf16.mxu1 %vm264_vm0, %v1064_v39 }
  0x42   :  { %992 = vmatmul.mubr.msk.bf16.gmra.mxu0 %vm264_vm0, %v1065_v40  ;;  %1024 = vmatmul.mubr.msk.bf16.gmra.mxu1 %vm264_vm0, %v1066_v41 }
  0x43   :  { %995 = vmatprep.mubr.msk.bf16.mxu0 %vm264_vm0, %v1067_v42  ;;  %1027 = vmatprep.mubr.msk.bf16.mxu1 %vm264_vm0, %v1068_v43 }
  0x4a   :  { %996 = vmatmul.mubr.msk.bf16.gmra.mxu0 %vm264_vm0, %v1069_v44  ;;  %1028 = vmatmul.mubr.msk.bf16.gmra.mxu1 %vm264_vm0, %v1070_v45 }
  0xd2   :  { %v969_v53 = vpop.f32.mrf.mxu0  ;;  %v1001_v54 = vpop.f32.mrf.mxu1 }
  0xd3   :  { %v661_v55 = vmul.f32 %v969_v53, %v1237_v51  ;;  %v693_v56 = vmul.f32 %v1001_v54, %v1237_v51 }
  0xd4   :  { %v399_v57 = vpop.f32.mrf.mxu0  ;;  %v527_v58 = vpop.f32.mrf.mxu1 }
  0xd5   :  { %v729_v59 = vadd.f32 %v1239_v52, %v661_v55  ;;  %v761_v60 = vadd.f32 %v1239_v52, %v693_v56  ;;  %v659_v61 = vmul.f32 %v1237_v51, %v399_v57  ;;  %v691_v62 = vmul.f32 %v1237_v51, %v527_v58 }
  0xd6   :  { %v970_v63 = vpop.f32.mrf.mxu0  ;;  %v1002_v0 = vpop.f32.mrf.mxu1 }
  0xd7   :  { %793 = vst [vmem:[%s1564_s3 + $0x10] sm:$0xff] %v729_v59  ;;  %825 = vst [vmem:[%s1564_s3 + $0x110] sm:$0xff] %v761_v60  ;;  %v727_v1 = vadd.f32 %v1239_v52, %v659_v61  ;;  %v759_v2 = vadd.f32 %v1239_v52, %v691_v62  ;;  %v662_v3 = vmul.f32 %v970_v63, %v1237_v51 }
  0xd8   :  { %v694_v4 = vmul.f32 %v1002_v0, %v1237_v51  ;;  %v402_v5 = vpop.f32.mrf.mxu0  ;;  %v530_v6 = vpop.f32.mrf.mxu1 }
  0xd9   :  { %791 = vst [vmem:[%s1564_s3] sm:$0xff] %v727_v1  ;;  %823 = vst [vmem:[%s1564_s3 + $0x100] sm:$0xff] %v759_v2  ;;  %v730_v7 = vadd.f32 %v1239_v52, %v662_v3  ;;  %v660_v9 = vmul.f32 %v1237_v51, %v402_v5  ;;  %v692_v10 = vmul.f32 %v1237_v51, %v530_v6 }
  0xda   :  { %v762_v8 = vadd.f32 %v1239_v52, %v694_v4  ;;  %v973_v11 = vpop.f32.mrf.mxu0  ;;  %v1005_v12 = vpop.f32.mrf.mxu1 }
  0xdb   :  { %794 = vst [vmem:[%s1564_s3 + $0x18] sm:$0xff] %v730_v7  ;;  %v728_v13 = vadd.f32 %v1239_v52, %v660_v9  ;;  %v760_v14 = vadd.f32 %v1239_v52, %v692_v10  ;;  %v665_v15 = vmul.f32 %v973_v11, %v1237_v51  ;;  %v697_v16 = vmul.f32 %v1005_v12, %v1237_v51 }
  0xdc   :  { %826 = vst [vmem:[%s1564_s3 + $0x118] sm:$0xff] %v762_v8  ;;  %v415_v17 = vpop.f32.mrf.mxu0  ;;  %v543_v18 = vpop.f32.mrf.mxu1 }
  0xdd   :  { %792 = vst [vmem:[%s1564_s3 + $0x8] sm:$0xff] %v728_v13  ;;  %824 = vst [vmem:[%s1564_s3 + $0x108] sm:$0xff] %v760_v14  ;;  %v733_v19 = vadd.f32 %v1239_v52, %v665_v15  ;;  %v765_v20 = vadd.f32 %v1239_v52, %v697_v16  ;;  %v663_v21 = vmul.f32 %v1237_v51, %v415_v17 }
  0xde   :  { %v695_v22 = vmul.f32 %v1237_v51, %v543_v18  ;;  %v974_v23 = vpop.f32.mrf.mxu0  ;;  %v1006_v24 = vpop.f32.mrf.mxu1 }
  0xdf   :  { %797 = vst [vmem:[%s1564_s3 + $0x30] sm:$0xff] %v733_v19  ;;  %829 = vst [vmem:[%s1564_s3 + $0x130] sm:$0xff] %v765_v20  ;;  %v731_v25 = vadd.f32 %v1239_v52, %v663_v21  ;;  %v666_v27 = vmul.f32 %v974_v23, %v1237_v51  ;;  %v698_v28 = vmul.f32 %v1006_v24, %v1237_v51 }
  0xe0   :  { %v763_v26 = vadd.f32 %v1239_v52, %v695_v22  ;;  %v418_v29 = vpop.f32.mrf.mxu0  ;;  %v546_v30 = vpop.f32.mrf.mxu1 }
  0xe1   :  { %795 = vst [vmem:[%s1564_s3 + $0x20] sm:$0xff] %v731_v25  ;;  %v734_v31 = vadd.f32 %v1239_v52, %v666_v27  ;;  %v766_v32 = vadd.f32 %v1239_v52, %v698_v28  ;;  %v664_v33 = vmul.f32 %v1237_v51, %v418_v29  ;;  %v696_v34 = vmul.f32 %v1237_v51, %v546_v30 }
  0xe2   :  { %827 = vst [vmem:[%s1564_s3 + $0x120] sm:$0xff] %v763_v26  ;;  %v977_v35 = vpop.f32.mrf.mxu0  ;;  %v1009_v36 = vpop.f32.mrf.mxu1 }
  0xe3   :  { %798 = vst [vmem:[%s1564_s3 + $0x38] sm:$0xff] %v734_v31  ;;  %830 = vst [vmem:[%s1564_s3 + $0x138] sm:$0xff] %v766_v32  ;;  %v732_v37 = vadd.f32 %v1239_v52, %v664_v33  ;;  %v764_v38 = vadd.f32 %v1239_v52, %v696_v34  ;;  %v669_v39 = vmul.f32 %v977_v35, %v1237_v51 }
  0xe4   :  { %v701_v40 = vmul.f32 %v1009_v36, %v1237_v51  ;;  %v431_v41 = vpop.f32.mrf.mxu0  ;;  %v559_v42 = vpop.f32.mrf.mxu1 }
  0xe5   :  { %796 = vst [vmem:[%s1564_s3 + $0x28] sm:$0xff] %v732_v37  ;;  %828 = vst [vmem:[%s1564_s3 + $0x128] sm:$0xff] %v764_v38  ;;  %v737_v43 = vadd.f32 %v1239_v52, %v669_v39  ;;  %v667_v45 = vmul.f32 %v1237_v51, %v431_v41  ;;  %v699_v46 = vmul.f32 %v1237_v51, %v559_v42 }
  0xe6   :  { %v769_v44 = vadd.f32 %v1239_v52, %v701_v40  ;;  %v978_v47 = vpop.f32.mrf.mxu0  ;;  %v1010_v48 = vpop.f32.mrf.mxu1 }
  0xe7   :  { %801 = vst [vmem:[%s1564_s3 + $0x50] sm:$0xff] %v737_v43  ;;  %v735_v49 = vadd.f32 %v1239_v52, %v667_v45  ;;  %v767_v50 = vadd.f32 %v1239_v52, %v699_v46  ;;  %v670_v53 = vmul.f32 %v978_v47, %v1237_v51  ;;  %v702_v54 = vmul.f32 %v1010_v48, %v1237_v51 }
  0xe8   :  { %833 = vst [vmem:[%s1564_s3 + $0x150] sm:$0xff] %v769_v44  ;;  %v434_v55 = vpop.f32.mrf.mxu0  ;;  %v562_v56 = vpop.f32.mrf.mxu1 }
  0xe9   :  { %799 = vst [vmem:[%s1564_s3 + $0x40] sm:$0xff] %v735_v49  ;;  %831 = vst [vmem:[%s1564_s3 + $0x140] sm:$0xff] %v767_v50  ;;  %v738_v57 = vadd.f32 %v1239_v52, %v670_v53  ;;  %v770_v58 = vadd.f32 %v1239_v52, %v702_v54  ;;  %v668_v59 = vmul.f32 %v1237_v51, %v434_v55 }
  0xea   :  { %v700_v60 = vmul.f32 %v1237_v51, %v562_v56  ;;  %v981_v61 = vpop.f32.mrf.mxu0  ;;  %v1013_v62 = vpop.f32.mrf.mxu1 }
  0xeb   :  { %802 = vst [vmem:[%s1564_s3 + $0x58] sm:$0xff] %v738_v57  ;;  %834 = vst [vmem:[%s1564_s3 + $0x158] sm:$0xff] %v770_v58  ;;  %v736_v63 = vadd.f32 %v1239_v52, %v668_v59  ;;  %v673_v1 = vmul.f32 %v981_v61, %v1237_v51  ;;  %v705_v2 = vmul.f32 %v1013_v62, %v1237_v51 }
  0xec   :  { %v768_v0 = vadd.f32 %v1239_v52, %v700_v60  ;;  %v447_v3 = vpop.f32.mrf.mxu0  ;;  %v575_v4 = vpop.f32.mrf.mxu1 }
  0xed   :  { %800 = vst [vmem:[%s1564_s3 + $0x48] sm:$0xff] %v736_v63  ;;  %v741_v5 = vadd.f32 %v1239_v52, %v673_v1  ;;  %v773_v6 = vadd.f32 %v1239_v52, %v705_v2  ;;  %v671_v7 = vmul.f32 %v1237_v51, %v447_v3  ;;  %v703_v8 = vmul.f32 %v1237_v51, %v575_v4 }
  0xee   :  { %832 = vst [vmem:[%s1564_s3 + $0x148] sm:$0xff] %v768_v0  ;;  %v982_v9 = vpop.f32.mrf.mxu0  ;;  %v1014_v10 = vpop.f32.mrf.mxu1 }
  0xef   :  { %805 = vst [vmem:[%s1564_s3 + $0x70] sm:$0xff] %v741_v5  ;;  %837 = vst [vmem:[%s1564_s3 + $0x170] sm:$0xff] %v773_v6  ;;  %v739_v11 = vadd.f32 %v1239_v52, %v671_v7  ;;  %v771_v12 = vadd.f32 %v1239_v52, %v703_v8  ;;  %v674_v13 = vmul.f32 %v982_v9, %v1237_v51 }
  0xf0   :  { %v706_v14 = vmul.f32 %v1014_v10, %v1237_v51  ;;  %v450_v15 = vpop.f32.mrf.mxu0  ;;  %v578_v16 = vpop.f32.mrf.mxu1 }
  0xf1   :  { %803 = vst [vmem:[%s1564_s3 + $0x60] sm:$0xff] %v739_v11  ;;  %835 = vst [vmem:[%s1564_s3 + $0x160] sm:$0xff] %v771_v12  ;;  %v742_v17 = vadd.f32 %v1239_v52, %v674_v13  ;;  %v672_v19 = vmul.f32 %v1237_v51, %v450_v15  ;;  %v704_v20 = vmul.f32 %v1237_v51, %v578_v16 }
  0xf2   :  { %v774_v18 = vadd.f32 %v1239_v52, %v706_v14  ;;  %v985_v21 = vpop.f32.mrf.mxu0  ;;  %v1017_v22 = vpop.f32.mrf.mxu1 }
  0xf3   :  { %806 = vst [vmem:[%s1564_s3 + $0x78] sm:$0xff] %v742_v17  ;;  %v740_v23 = vadd.f32 %v1239_v52, %v672_v19  ;;  %v772_v24 = vadd.f32 %v1239_v52, %v704_v20  ;;  %v677_v25 = vmul.f32 %v985_v21, %v1237_v51  ;;  %v709_v26 = vmul.f32 %v1017_v22, %v1237_v51 }
  0xf4   :  { %838 = vst [vmem:[%s1564_s3 + $0x178] sm:$0xff] %v774_v18  ;;  %v463_v27 = vpop.f32.mrf.mxu0  ;;  %v591_v28 = vpop.f32.mrf.mxu1 }
  0xf5   :  { %804 = vst [vmem:[%s1564_s3 + $0x68] sm:$0xff] %v740_v23  ;;  %836 = vst [vmem:[%s1564_s3 + $0x168] sm:$0xff] %v772_v24  ;;  %v745_v29 = vadd.f32 %v1239_v52, %v677_v25  ;;  %v777_v30 = vadd.f32 %v1239_v52, %v709_v26  ;;  %v675_v31 = vmul.f32 %v1237_v51, %v463_v27 }
  0xf6   :  { %v707_v32 = vmul.f32 %v1237_v51, %v591_v28  ;;  %v986_v33 = vpop.f32.mrf.mxu0  ;;  %v1018_v34 = vpop.f32.mrf.mxu1 }
  0xf7   :  { %809 = vst [vmem:[%s1564_s3 + $0x90] sm:$0xff] %v745_v29  ;;  %841 = vst [vmem:[%s1564_s3 + $0x190] sm:$0xff] %v777_v30  ;;  %v743_v35 = vadd.f32 %v1239_v52, %v675_v31  ;;  %v678_v37 = vmul.f32 %v986_v33, %v1237_v51  ;;  %v710_v38 = vmul.f32 %v1018_v34, %v1237_v51 }
  0xf8   :  { %v775_v36 = vadd.f32 %v1239_v52, %v707_v32  ;;  %v466_v39 = vpop.f32.mrf.mxu0  ;;  %v594_v40 = vpop.f32.mrf.mxu1 }
  0xf9   :  { %807 = vst [vmem:[%s1564_s3 + $0x80] sm:$0xff] %v743_v35  ;;  %v746_v41 = vadd.f32 %v1239_v52, %v678_v37  ;;  %v778_v42 = vadd.f32 %v1239_v52, %v710_v38  ;;  %v676_v43 = vmul.f32 %v1237_v51, %v466_v39  ;;  %v708_v44 = vmul.f32 %v1237_v51, %v594_v40 }
  0xfa   :  { %839 = vst [vmem:[%s1564_s3 + $0x180] sm:$0xff] %v775_v36  ;;  %v989_v45 = vpop.f32.mrf.mxu0  ;;  %v1021_v46 = vpop.f32.mrf.mxu1 }
  0xfb   :  { %810 = vst [vmem:[%s1564_s3 + $0x98] sm:$0xff] %v746_v41  ;;  %842 = vst [vmem:[%s1564_s3 + $0x198] sm:$0xff] %v778_v42  ;;  %v744_v47 = vadd.f32 %v1239_v52, %v676_v43  ;;  %v776_v48 = vadd.f32 %v1239_v52, %v708_v44  ;;  %v681_v49 = vmul.f32 %v989_v45, %v1237_v51 }
  0xfc   :  { %v713_v50 = vmul.f32 %v1021_v46, %v1237_v51  ;;  %v479_v53 = vpop.f32.mrf.mxu0  ;;  %v607_v54 = vpop.f32.mrf.mxu1 }
  0xfd   :  { %808 = vst [vmem:[%s1564_s3 + $0x88] sm:$0xff] %v744_v47  ;;  %840 = vst [vmem:[%s1564_s3 + $0x188] sm:$0xff] %v776_v48  ;;  %v749_v55 = vadd.f32 %v1239_v52, %v681_v49  ;;  %v679_v57 = vmul.f32 %v1237_v51, %v479_v53  ;;  %v711_v58 = vmul.f32 %v1237_v51, %v607_v54 }
  0xfe   :  { %v781_v56 = vadd.f32 %v1239_v52, %v713_v50  ;;  %v990_v59 = vpop.f32.mrf.mxu0  ;;  %v1022_v60 = vpop.f32.mrf.mxu1 }
  0xff   :  { %813 = vst [vmem:[%s1564_s3 + $0xb0] sm:$0xff] %v749_v55  ;;  %v747_v61 = vadd.f32 %v1239_v52, %v679_v57  ;;  %v779_v62 = vadd.f32 %v1239_v52, %v711_v58  ;;  %v682_v63 = vmul.f32 %v990_v59, %v1237_v51  ;;  %v714_v0 = vmul.f32 %v1022_v60, %v1237_v51 }
 0x100   :  { %845 = vst [vmem:[%s1564_s3 + $0x1b0] sm:$0xff] %v781_v56  ;;  %v482_v1 = vpop.f32.mrf.mxu0  ;;  %v610_v2 = vpop.f32.mrf.mxu1 }
 0x101   :  { %811 = vst [vmem:[%s1564_s3 + $0xa0] sm:$0xff] %v747_v61  ;;  %843 = vst [vmem:[%s1564_s3 + $0x1a0] sm:$0xff] %v779_v62  ;;  %v750_v3 = vadd.f32 %v1239_v52, %v682_v63  ;;  %v782_v4 = vadd.f32 %v1239_v52, %v714_v0  ;;  %v680_v5 = vmul.f32 %v1237_v51, %v482_v1 }
 0x102   :  { %v712_v6 = vmul.f32 %v1237_v51, %v610_v2  ;;  %v993_v7 = vpop.f32.mrf.mxu0  ;;  %v1025_v8 = vpop.f32.mrf.mxu1 }
 0x103   :  { %814 = vst [vmem:[%s1564_s3 + $0xb8] sm:$0xff] %v750_v3  ;;  %846 = vst [vmem:[%s1564_s3 + $0x1b8] sm:$0xff] %v782_v4  ;;  %v748_v9 = vadd.f32 %v1239_v52, %v680_v5  ;;  %v685_v11 = vmul.f32 %v993_v7, %v1237_v51  ;;  %v717_v12 = vmul.f32 %v1025_v8, %v1237_v51 }
 0x104   :  { %v780_v10 = vadd.f32 %v1239_v52, %v712_v6  ;;  %v495_v13 = vpop.f32.mrf.mxu0  ;;  %v623_v14 = vpop.f32.mrf.mxu1 }
 0x105   :  { %812 = vst [vmem:[%s1564_s3 + $0xa8] sm:$0xff] %v748_v9  ;;  %v753_v15 = vadd.f32 %v1239_v52, %v685_v11  ;;  %v785_v16 = vadd.f32 %v1239_v52, %v717_v12  ;;  %v683_v17 = vmul.f32 %v1237_v51, %v495_v13  ;;  %v715_v18 = vmul.f32 %v1237_v51, %v623_v14 }
 0x106   :  { %844 = vst [vmem:[%s1564_s3 + $0x1a8] sm:$0xff] %v780_v10  ;;  %v994_v19 = vpop.f32.mrf.mxu0  ;;  %v1026_v20 = vpop.f32.mrf.mxu1 }
 0x107   :  { %817 = vst [vmem:[%s1564_s3 + $0xd0] sm:$0xff] %v753_v15  ;;  %849 = vst [vmem:[%s1564_s3 + $0x1d0] sm:$0xff] %v785_v16  ;;  %v751_v21 = vadd.f32 %v1239_v52, %v683_v17  ;;  %v783_v22 = vadd.f32 %v1239_v52, %v715_v18  ;;  %v686_v23 = vmul.f32 %v994_v19, %v1237_v51 }
 0x108   :  { %v718_v24 = vmul.f32 %v1026_v20, %v1237_v51  ;;  %v498_v25 = vpop.f32.mrf.mxu0  ;;  %v626_v26 = vpop.f32.mrf.mxu1 }
 0x109   :  { %815 = vst [vmem:[%s1564_s3 + $0xc0] sm:$0xff] %v751_v21  ;;  %847 = vst [vmem:[%s1564_s3 + $0x1c0] sm:$0xff] %v783_v22  ;;  %v754_v27 = vadd.f32 %v1239_v52, %v686_v23  ;;  %v684_v29 = vmul.f32 %v1237_v51, %v498_v25  ;;  %v716_v30 = vmul.f32 %v1237_v51, %v626_v26 }
 0x10a   :  { %v786_v28 = vadd.f32 %v1239_v52, %v718_v24  ;;  %v997_v31 = vpop.f32.mrf.mxu0  ;;  %v1029_v32 = vpop.f32.mrf.mxu1 }
 0x10b   :  { %818 = vst [vmem:[%s1564_s3 + $0xd8] sm:$0xff] %v754_v27  ;;  %v752_v33 = vadd.f32 %v1239_v52, %v684_v29  ;;  %v784_v34 = vadd.f32 %v1239_v52, %v716_v30  ;;  %v689_v35 = vmul.f32 %v997_v31, %v1237_v51  ;;  %v721_v36 = vmul.f32 %v1029_v32, %v1237_v51 }
 0x10c   :  { %850 = vst [vmem:[%s1564_s3 + $0x1d8] sm:$0xff] %v786_v28  ;;  %v511_v37 = vpop.f32.mrf.mxu0  ;;  %v639_v38 = vpop.f32.mrf.mxu1 }
 0x10d   :  { %816 = vst [vmem:[%s1564_s3 + $0xc8] sm:$0xff] %v752_v33  ;;  %848 = vst [vmem:[%s1564_s3 + $0x1c8] sm:$0xff] %v784_v34  ;;  %v757_v39 = vadd.f32 %v1239_v52, %v689_v35  ;;  %v789_v40 = vadd.f32 %v1239_v52, %v721_v36  ;;  %v687_v41 = vmul.f32 %v1237_v51, %v511_v37 }
 0x10e   :  { %v719_v42 = vmul.f32 %v1237_v51, %v639_v38  ;;  %v998_v43 = vpop.f32.mrf.mxu0  ;;  %v1030_v44 = vpop.f32.mrf.mxu1 }
 0x10f   :  { %821 = vst [vmem:[%s1564_s3 + $0xf0] sm:$0xff] %v757_v39  ;;  %853 = vst [vmem:[%s1564_s3 + $0x1f0] sm:$0xff] %v789_v40  ;;  %v755_v45 = vadd.f32 %v1239_v52, %v687_v41  ;;  %v690_v47 = vmul.f32 %v998_v43, %v1237_v51  ;;  %v722_v48 = vmul.f32 %v1030_v44, %v1237_v51 }
 0x110   :  { %v787_v46 = vadd.f32 %v1239_v52, %v719_v42  ;;  %v514_v49 = vpop.f32.mrf.mxu0  ;;  %v642_v50 = vpop.f32.mrf.mxu1 }
 0x111   :  { %819 = vst [vmem:[%s1564_s3 + $0xe0] sm:$0xff] %v755_v45  ;;  %v758_v53 = vadd.f32 %v1239_v52, %v690_v47  ;;  %v790_v54 = vadd.f32 %v1239_v52, %v722_v48  ;;  %v688_v55 = vmul.f32 %v1237_v51, %v514_v49  ;;  %v720_v56 = vmul.f32 %v1237_v51, %v642_v50 }
 0x112   :  { %851 = vst [vmem:[%s1564_s3 + $0x1e0] sm:$0xff] %v787_v46 }
 0x113   :  { %822 = vst [vmem:[%s1564_s3 + $0xf8] sm:$0xff] %v758_v53  ;;  %854 = vst [vmem:[%s1564_s3 + $0x1f8] sm:$0xff] %v790_v54  ;;  %v756_v57 = vadd.f32 %v1239_v52, %v688_v55  ;;  %v788_v58 = vadd.f32 %v1239_v52, %v720_v56 }
 0x115   :  { %820 = vst [vmem:[%s1564_s3 + $0xe8] sm:$0xff] %v756_v57  ;;  %852 = vst [vmem:[%s1564_s3 + $0x1e8] sm:$0xff] %v788_v58 }

</bundles_post_ra>
